<compile_context>
chip_gen: v5e
topology: v5e:2x2
jax: 0.10.0
libtpu: 0.0.40
codegen_flags: <defaults>
</compile_context>

<pallas_src>
import jax
import jax.numpy as jnp
from jax import lax
from jax.experimental import pallas as pl
from jax.experimental.pallas import tpu as pltpu

K = 3          # knn_interpolate k
BIG = 1e30     # "infinity" stand-in to mask cross-batch pairs / already-selected neighbors


def fp_kernel(x_src_ref, pos_srcT_ref, b_srcT_ref,
              pos_tgt_ref, b_tgt_ref, x_skip_ref,
              w1a_ref, w1b_ref, b1_ref, w2_ref, b2_ref,
              out_ref):
    pos_t = pos_tgt_ref[...]          # (TM, 3) f32, target (skip) positions tile
    pos_sT = pos_srcT_ref[...]        # (3, N)  f32, source positions, transposed
    x_src = x_src_ref[...]            # (N, Cx) f32, source features

    N = pos_sT.shape[1]

    # Exact squared pairwise distances, matching the reference's sum((t - s)^2) arithmetic.
    d2 = ((pos_t[:, 0:1] - pos_sT[0:1, :]) ** 2
          + (pos_t[:, 1:2] - pos_sT[1:2, :]) ** 2
          + (pos_t[:, 2:3] - pos_sT[2:3, :]) ** 2)                  # (TM, N)

    # Mask out pairs from different batches (PyG knn is per-batch).
    same = b_tgt_ref[...] == b_srcT_ref[...]                        # (TM,1)==(1,N) -> (TM,N)
    d2 = jnp.where(same, d2, BIG)

    # Per-pair inverse-squared-distance weights, computed once (hoisted out of the K loop).
    recip_d2 = pl.reciprocal(jnp.maximum(d2, 1e-16), approx=False)  # (TM, N)

    col = lax.broadcasted_iota(jnp.int32, d2.shape, 1)

    # Accumulate a sparse (K one-hots per row) weight matrix; the whole weighted k-NN gather
    # then becomes ONE MXU matmul instead of K.
    wmat = jnp.zeros_like(d2)
    d = d2
    for _ in range(K):
        dmin = jnp.min(d, axis=-1, keepdims=True)                   # (TM, 1)
        first = jnp.min(jnp.where(d <= dmin, col, N),
                        axis=-1, keepdims=True)                     # first-index tie-break
        sel = col == first                                          # (TM, N) one-hot
        wmat = wmat + jnp.where(sel, recip_d2, 0.0)
        d = jnp.where(sel, BIG, d)                                  # remove selected neighbor

    wsum = jnp.sum(wmat, axis=-1, keepdims=True)                    # (TM, 1)
    acc = jnp.dot(wmat, x_src, preferred_element_type=jnp.float32)  # single gather matmul
    x_interp = acc * pl.reciprocal(jnp.maximum(wsum, 1e-36), approx=False)

    # Split-weight form of Linear(cat([x_interp, x_skip])) -- no lane-dim concat needed.
    h = jnp.dot(x_interp, w1a_ref[...], preferred_element_type=jnp.float32)
    h = h + jnp.dot(x_skip_ref[...], w1b_ref[...], preferred_element_type=jnp.float32)
    h = jnp.maximum(h + b1_ref[...], 0.0)
    y = jnp.dot(h, w2_ref[...], preferred_element_type=jnp.float32) + b2_ref[...]
    out_ref[...] = y.astype(out_ref.dtype)


def _ceil_to(a, m):
    return ((a + m - 1) // m) * m


def fp_module_forward(x, pos, batch, x_skip, pos_skip, batch_skip, params, *, tm=256):
    """Pallas implementation of FPModule.forward. Returns (x_out, pos_skip, batch_skip)."""
    x = x.astype(jnp.float32)
    pos = pos.astype(jnp.float32)
    x_skip = x_skip.astype(jnp.float32)
    pos_skip_f = pos_skip.astype(jnp.float32)

    N, Cx = x.shape
    M, Cs = x_skip.shape
    w1, b1, w2, b2 = params
    Cin, HID = w1.shape
    assert Cin == Cx + Cs
    Cout = w2.shape[1]

    # Split the first linear layer so the kernel never concatenates on the lane axis:
    #   cat([xi, xs]) @ w1 == xi @ w1a + xs @ w1b
    w1a = w1[:Cx, :].astype(jnp.float32)
    w1b = w1[Cx:, :].astype(jnp.float32)
    b1r = b1.reshape(1, HID).astype(jnp.float32)
    w2f = w2.astype(jnp.float32)
    b2r = b2.reshape(1, Cout).astype(jnp.float32)

    pos_sT = pos.T                                      # (3, N)
    b_sT = batch.reshape(1, N).astype(jnp.int32)        # (1, N)
    b_tgt = batch_skip.reshape(M, 1).astype(jnp.int32)  # (M, 1)

    # Target tiling: biggest tile that helps, rounded to the sublane rule, target dim padded.
    tm_eff = _ceil_to(min(tm, _ceil_to(M, 8)), 8)
    M_pad = _ceil_to(M, tm_eff)
    if M_pad != M:
        padt = M_pad - M
        pos_tgt = jnp.pad(pos_skip_f, ((0, padt), (0, 0)))
        b_tgt_p = jnp.pad(b_tgt, ((0, padt), (0, 0)))
        x_skip_p = jnp.pad(x_skip, ((0, padt), (0, 0)))
    else:
        pos_tgt, b_tgt_p, x_skip_p = pos_skip_f, b_tgt, x_skip

    grid = (M_pad // tm_eff,)

    # Size the scoped-VMEM limit from the actual working set (resident source cloud + weights,
    # double-buffered target tiles, and the in-kernel (TM, N) temporaries), capped at 64 MiB
    # so it is valid on every generation (v7x physical VMEM is 64 MiB).
    f32b = 4
    rep_bytes = (x.size + pos_sT.size + b_sT.size
                 + w1a.size + w1b.size + b1r.size + w2f.size + b2r.size) * f32b
    tile_bytes = tm_eff * (3 + 1 + Cs + Cout) * f32b
    temp_bytes = 4 * tm_eff * N * f32b                   # d2 / recip_d2 / wmat / scratch
    vmem_limit = int(min(max(2 * rep_bytes + 4 * tile_bytes + temp_bytes + (4 << 20),
                             32 << 20), 64 << 20))

    out = pl.pallas_call(
        fp_kernel,
        out_shape=jax.ShapeDtypeStruct((M_pad, Cout), jnp.float32),
        grid_spec=pltpu.PrefetchScalarGridSpec(
            num_scalar_prefetch=0,
            grid=grid,
            in_specs=[
                # Constant-index blocks: DMA'd once, resident in VMEM across the whole grid.
                pl.BlockSpec((N, Cx), lambda i: (0, 0)),       # x (source features)
                pl.BlockSpec((3, N), lambda i: (0, 0)),        # pos^T (source)
                pl.BlockSpec((1, N), lambda i: (0, 0)),        # batch^T (source)
                # Per-grid-step target tiles.
                pl.BlockSpec((tm_eff, 3), lambda i: (i, 0)),   # pos_skip tile
                pl.BlockSpec((tm_eff, 1), lambda i: (i, 0)),   # batch_skip tile
                pl.BlockSpec((tm_eff, Cs), lambda i: (i, 0)),  # x_skip tile
                # MLP parameters (resident).
                pl.BlockSpec((Cx, HID), lambda i: (0, 0)),
                pl.BlockSpec((Cs, HID), lambda i: (0, 0)),
                pl.BlockSpec((1, HID), lambda i: (0, 0)),
                pl.BlockSpec((HID, Cout), lambda i: (0, 0)),
                pl.BlockSpec((1, Cout), lambda i: (0, 0)),
            ],
            out_specs=pl.BlockSpec((tm_eff, Cout), lambda i: (i, 0)),
        ),
        compiler_params=pltpu.CompilerParams(
            dimension_semantics=("parallel",),
            vmem_limit_bytes=vmem_limit),
    )(x, pos_sT, b_sT, pos_tgt, b_tgt_p, x_skip_p, w1a, w1b, b1r, w2f, b2r)

    return out[:M], pos_skip, batch_skip


def ref_forward(x, pos, batch, x_skip, pos_skip, batch_skip, params, k=K):
    """Pure-JAX reference mirroring torch_geometric's knn_interpolate + MLP."""
    d2 = jnp.sum((pos_skip[:, None, :] - pos[None, :, :]) ** 2, axis=-1)
    same = batch_skip[:, None] == batch[None, :]
    d2 = jnp.where(same, d2, BIG)
    idx = jnp.argsort(d2, axis=-1)[:, :k]                       # (M, k)
    dk = jnp.take_along_axis(d2, idx, axis=-1)                  # (M, k)
    w = 1.0 / jnp.maximum(dk, 1e-16)
    xk = x[idx]                                                 # (M, k, Cx)
    xi = jnp.sum(xk * w[..., None], axis=1) / jnp.sum(w, axis=1, keepdims=True)
    xc = jnp.concatenate([xi, x_skip], axis=1)
    w1, b1, w2, b2 = params
    h = jnp.maximum(xc @ w1 + b1, 0.0)
    return h @ w2 + b2


if __name__ == "__main__":
    key = jax.random.PRNGKey(0)
    kx, kp, kps, kxs, k1, k2 = jax.random.split(key, 6)

    N_SRC, M_TGT = 16, 32          # coarse (source) / fine (skip, target) point counts
    CX, CS = 8, 8                  # source feature dim, skip feature dim
    HID, COUT = 32, 32             # nn = MLP([CX+CS, HID, COUT])

    x = jax.random.normal(kx, (N_SRC, CX), dtype=jnp.float32)
    pos = jax.random.uniform(kp, (N_SRC, 3), dtype=jnp.float32)
    batch = jnp.concatenate([jnp.zeros(N_SRC // 2, jnp.int32),
                             jnp.ones(N_SRC // 2, jnp.int32)])
    x_skip = jax.random.normal(kxs, (M_TGT, CS), dtype=jnp.float32)
    pos_skip = jax.random.uniform(kps, (M_TGT, 3), dtype=jnp.float32)
    batch_skip = jnp.concatenate([jnp.zeros(M_TGT // 2, jnp.int32),
                                  jnp.ones(M_TGT // 2, jnp.int32)])

    # Deterministic parameter init for the per-point MLP (the module's `nn`).
    w1 = 0.1 * jax.random.normal(k1, (CX + CS, HID), dtype=jnp.float32)
    b1 = jnp.zeros((HID,), jnp.float32)
    w2 = 0.1 * jax.random.normal(k2, (HID, COUT), dtype=jnp.float32)
    b2 = jnp.zeros((COUT,), jnp.float32)
    params = (w1, b1, w2, b2)

    out, pos_out, batch_out = fp_module_forward(
        x, pos, batch, x_skip, pos_skip, batch_skip, params)
    jax.block_until_ready(out)

    ref = ref_forward(x, pos, batch, x_skip, pos_skip, batch_skip, params)
    assert out.shape == (M_TGT, COUT)
    assert jnp.allclose(out, ref, rtol=1e-3, atol=1e-3), "mismatch vs reference"

    print("KERNEL_OK")
</pallas_src>

<mosaic_0001>
module attributes {stable_mosaic.version = 11 : i64} {
  func.func @fp_kernel(%arg0: i32, %arg1: memref<16x8xf32, #tpu.memory_space<vmem>>, %arg2: memref<3x16xf32, #tpu.memory_space<vmem>>, %arg3: memref<1x16xi32, #tpu.memory_space<vmem>>, %arg4: memref<32x3xf32, #tpu.memory_space<vmem>>, %arg5: memref<32x1xi32, #tpu.memory_space<vmem>>, %arg6: memref<32x8xf32, #tpu.memory_space<vmem>>, %arg7: memref<8x32xf32, #tpu.memory_space<vmem>>, %arg8: memref<8x32xf32, #tpu.memory_space<vmem>>, %arg9: memref<1x32xf32, #tpu.memory_space<vmem>>, %arg10: memref<32x32xf32, #tpu.memory_space<vmem>>, %arg11: memref<1x32xf32, #tpu.memory_space<vmem>>, %arg12: memref<32x32xf32, #tpu.memory_space<vmem>>) attributes {dimension_semantics = [#tpu.dimension_semantics<parallel>], iteration_bounds = array<i64: 1>, scalar_prefetch = 0 : i64, scratch_operands = 0 : i64, tpu.core_type = #tpu.core_type<tc>, window_params = [{pipeline_mode = #tpu.pipeline_mode<synchronous>, transform_indices = @transform_0, window_bounds = array<i64: 16, 8>}, {pipeline_mode = #tpu.pipeline_mode<synchronous>, transform_indices = @transform_1, window_bounds = array<i64: 3, 16>}, {pipeline_mode = #tpu.pipeline_mode<synchronous>, transform_indices = @transform_2, window_bounds = array<i64: 1, 16>}, {transform_indices = @transform_3, window_bounds = array<i64: 32, 3>}, {transform_indices = @transform_4, window_bounds = array<i64: 32, 1>}, {transform_indices = @transform_5, window_bounds = array<i64: 32, 8>}, {pipeline_mode = #tpu.pipeline_mode<synchronous>, transform_indices = @transform_6, window_bounds = array<i64: 8, 32>}, {pipeline_mode = #tpu.pipeline_mode<synchronous>, transform_indices = @transform_7, window_bounds = array<i64: 8, 32>}, {pipeline_mode = #tpu.pipeline_mode<synchronous>, transform_indices = @transform_8, window_bounds = array<i64: 1, 32>}, {pipeline_mode = #tpu.pipeline_mode<synchronous>, transform_indices = @transform_9, window_bounds = array<i64: 32, 32>}, {pipeline_mode = #tpu.pipeline_mode<synchronous>, transform_indices = @transform_10, window_bounds = array<i64: 1, 32>}, {transform_indices = @transform_11, window_bounds = array<i64: 32, 32>}]} {
    %c0 = arith.constant 0 : index
    %c0_0 = arith.constant 0 : index
    %0 = vector.load %arg4[%c0, %c0_0] : memref<32x3xf32, #tpu.memory_space<vmem>>, vector<32x3xf32>
    %c0_1 = arith.constant 0 : index
    %c0_2 = arith.constant 0 : index
    %1 = vector.load %arg2[%c0_1, %c0_2] : memref<3x16xf32, #tpu.memory_space<vmem>>, vector<3x16xf32>
    %c0_3 = arith.constant 0 : index
    %c0_4 = arith.constant 0 : index
    %2 = vector.load %arg1[%c0_3, %c0_4] : memref<16x8xf32, #tpu.memory_space<vmem>>, vector<16x8xf32>
    %3 = vector.extract_strided_slice %0 {offsets = [0, 0], sizes = [32, 1], strides = [1, 1]} : vector<32x3xf32> to vector<32x1xf32>
    %4 = vector.extract_strided_slice %1 {offsets = [0, 0], sizes = [1, 16], strides = [1, 1]} : vector<3x16xf32> to vector<1x16xf32>
    %5 = vector.broadcast %3 : vector<32x1xf32> to vector<32x16xf32>
    %6 = vector.broadcast %4 : vector<1x16xf32> to vector<32x16xf32>
    %7 = arith.subf %5, %6 : vector<32x16xf32>
    %8 = arith.mulf %7, %7 : vector<32x16xf32>
    %9 = vector.extract_strided_slice %0 {offsets = [0, 1], sizes = [32, 1], strides = [1, 1]} : vector<32x3xf32> to vector<32x1xf32>
    %10 = vector.extract_strided_slice %1 {offsets = [1, 0], sizes = [1, 16], strides = [1, 1]} : vector<3x16xf32> to vector<1x16xf32>
    %11 = vector.broadcast %9 : vector<32x1xf32> to vector<32x16xf32>
    %12 = vector.broadcast %10 : vector<1x16xf32> to vector<32x16xf32>
    %13 = arith.subf %11, %12 : vector<32x16xf32>
    %14 = arith.mulf %13, %13 : vector<32x16xf32>
    %15 = arith.addf %8, %14 : vector<32x16xf32>
    %16 = vector.extract_strided_slice %0 {offsets = [0, 2], sizes = [32, 1], strides = [1, 1]} : vector<32x3xf32> to vector<32x1xf32>
    %17 = vector.extract_strided_slice %1 {offsets = [2, 0], sizes = [1, 16], strides = [1, 1]} : vector<3x16xf32> to vector<1x16xf32>
    %18 = vector.broadcast %16 : vector<32x1xf32> to vector<32x16xf32>
    %19 = vector.broadcast %17 : vector<1x16xf32> to vector<32x16xf32>
    %20 = arith.subf %18, %19 : vector<32x16xf32>
    %21 = arith.mulf %20, %20 : vector<32x16xf32>
    %22 = arith.addf %15, %21 : vector<32x16xf32>
    %c0_5 = arith.constant 0 : index
    %c0_6 = arith.constant 0 : index
    %23 = vector.load %arg5[%c0_5, %c0_6] : memref<32x1xi32, #tpu.memory_space<vmem>>, vector<32x1xi32>
    %c0_7 = arith.constant 0 : index
    %c0_8 = arith.constant 0 : index
    %24 = vector.load %arg3[%c0_7, %c0_8] : memref<1x16xi32, #tpu.memory_space<vmem>>, vector<1x16xi32>
    %25 = vector.broadcast %23 : vector<32x1xi32> to vector<32x16xi32>
    %26 = vector.broadcast %24 : vector<1x16xi32> to vector<32x16xi32>
    %27 = arith.cmpi eq, %25, %26 : vector<32x16xi32>
    %cst = arith.constant 1.000000e+30 : f32
    %28 = vector.broadcast %cst : f32 to vector<32x16xf32>
    %29 = arith.select %27, %22, %28 : vector<32x16xi1>, vector<32x16xf32>
    %cst_9 = arith.constant 1.000000e-16 : f32
    %30 = vector.broadcast %cst_9 : f32 to vector<32x16xf32>
    %31 = arith.maximumf %29, %30 : vector<32x16xf32>
    %32 = tpu.reciprocal %31 : vector<32x16xf32> -> vector<32x16xf32>
    %33 = tpu.iota {dimensions = array<i32: 1>} : vector<32x16xi32>
    %cst_10 = arith.constant 0.000000e+00 : f32
    %34 = vector.broadcast %cst_10 : f32 to vector<32x16xf32>
    %cst_11 = arith.constant dense<0x7F800000> : vector<32xf32>
    %35 = vector.multi_reduction <minimumf>, %29, %cst_11 [1] : vector<32x16xf32> to vector<32xf32>
    %36 = vector.shape_cast %35 : vector<32xf32> to vector<32x1xf32>
    %37 = vector.broadcast %36 : vector<32x1xf32> to vector<32x16xf32>
    %38 = arith.cmpf ole, %29, %37 : vector<32x16xf32>
    %c16_i32 = arith.constant 16 : i32
    %39 = vector.broadcast %c16_i32 : i32 to vector<32x16xi32>
    %40 = arith.select %38, %33, %39 : vector<32x16xi1>, vector<32x16xi32>
    %cst_12 = arith.constant dense<2147483647> : vector<32xi32>
    %41 = vector.multi_reduction <minsi>, %40, %cst_12 [1] : vector<32x16xi32> to vector<32xi32>
    %42 = vector.shape_cast %41 : vector<32xi32> to vector<32x1xi32>
    %43 = vector.broadcast %42 : vector<32x1xi32> to vector<32x16xi32>
    %44 = arith.cmpi eq, %33, %43 : vector<32x16xi32>
    %cst_13 = arith.constant 0.000000e+00 : f32
    %45 = vector.broadcast %cst_13 : f32 to vector<32x16xf32>
    %46 = arith.select %44, %32, %45 : vector<32x16xi1>, vector<32x16xf32>
    %47 = arith.addf %34, %46 : vector<32x16xf32>
    %cst_14 = arith.constant 1.000000e+30 : f32
    %48 = vector.broadcast %cst_14 : f32 to vector<32x16xf32>
    %49 = arith.select %44, %48, %29 : vector<32x16xi1>, vector<32x16xf32>
    %cst_15 = arith.constant dense<0x7F800000> : vector<32xf32>
    %50 = vector.multi_reduction <minimumf>, %49, %cst_15 [1] : vector<32x16xf32> to vector<32xf32>
    %51 = vector.shape_cast %50 : vector<32xf32> to vector<32x1xf32>
    %52 = vector.broadcast %51 : vector<32x1xf32> to vector<32x16xf32>
    %53 = arith.cmpf ole, %49, %52 : vector<32x16xf32>
    %c16_i32_16 = arith.constant 16 : i32
    %54 = vector.broadcast %c16_i32_16 : i32 to vector<32x16xi32>
    %55 = arith.select %53, %33, %54 : vector<32x16xi1>, vector<32x16xi32>
    %cst_17 = arith.constant dense<2147483647> : vector<32xi32>
    %56 = vector.multi_reduction <minsi>, %55, %cst_17 [1] : vector<32x16xi32> to vector<32xi32>
    %57 = vector.shape_cast %56 : vector<32xi32> to vector<32x1xi32>
    %58 = vector.broadcast %57 : vector<32x1xi32> to vector<32x16xi32>
    %59 = arith.cmpi eq, %33, %58 : vector<32x16xi32>
    %cst_18 = arith.constant 0.000000e+00 : f32
    %60 = vector.broadcast %cst_18 : f32 to vector<32x16xf32>
    %61 = arith.select %59, %32, %60 : vector<32x16xi1>, vector<32x16xf32>
    %62 = arith.addf %47, %61 : vector<32x16xf32>
    %cst_19 = arith.constant 1.000000e+30 : f32
    %63 = vector.broadcast %cst_19 : f32 to vector<32x16xf32>
    %64 = arith.select %59, %63, %49 : vector<32x16xi1>, vector<32x16xf32>
    %cst_20 = arith.constant dense<0x7F800000> : vector<32xf32>
    %65 = vector.multi_reduction <minimumf>, %64, %cst_20 [1] : vector<32x16xf32> to vector<32xf32>
    %66 = vector.shape_cast %65 : vector<32xf32> to vector<32x1xf32>
    %67 = vector.broadcast %66 : vector<32x1xf32> to vector<32x16xf32>
    %68 = arith.cmpf ole, %64, %67 : vector<32x16xf32>
    %c16_i32_21 = arith.constant 16 : i32
    %69 = vector.broadcast %c16_i32_21 : i32 to vector<32x16xi32>
    %70 = arith.select %68, %33, %69 : vector<32x16xi1>, vector<32x16xi32>
    %cst_22 = arith.constant dense<2147483647> : vector<32xi32>
    %71 = vector.multi_reduction <minsi>, %70, %cst_22 [1] : vector<32x16xi32> to vector<32xi32>
    %72 = vector.shape_cast %71 : vector<32xi32> to vector<32x1xi32>
    %73 = vector.broadcast %72 : vector<32x1xi32> to vector<32x16xi32>
    %74 = arith.cmpi eq, %33, %73 : vector<32x16xi32>
    %cst_23 = arith.constant 0.000000e+00 : f32
    %75 = vector.broadcast %cst_23 : f32 to vector<32x16xf32>
    %76 = arith.select %74, %32, %75 : vector<32x16xi1>, vector<32x16xf32>
    %77 = arith.addf %62, %76 : vector<32x16xf32>
    %cst_24 = arith.constant dense<0.000000e+00> : vector<32xf32>
    %78 = vector.multi_reduction <add>, %77, %cst_24 [1] : vector<32x16xf32> to vector<32xf32>
    %79 = vector.shape_cast %78 : vector<32xf32> to vector<32x1xf32>
    %cst_25 = arith.constant dense<0.000000e+00> : vector<32x8xf32>
    %80 = tpu.matmul %77, %2, %cst_25 {dimension_numbers = #tpu.dot_dimension_numbers<[1], [0], [0], [1], [0, 0, 1, 1], [], []>} : vector<32x16xf32>, vector<16x8xf32>, vector<32x8xf32> -> vector<32x8xf32>
    %cst_26 = arith.constant 1.000000e-36 : f32
    %81 = vector.broadcast %cst_26 : f32 to vector<32x1xf32>
    %82 = arith.maximumf %79, %81 : vector<32x1xf32>
    %83 = tpu.reciprocal %82 : vector<32x1xf32> -> vector<32x1xf32>
    %84 = vector.broadcast %83 : vector<32x1xf32> to vector<32x8xf32>
    %85 = arith.mulf %80, %84 : vector<32x8xf32>
    %c0_27 = arith.constant 0 : index
    %c0_28 = arith.constant 0 : index
    %86 = vector.load %arg7[%c0_27, %c0_28] : memref<8x32xf32, #tpu.memory_space<vmem>>, vector<8x32xf32>
    %cst_29 = arith.constant dense<0.000000e+00> : vector<32x32xf32>
    %87 = tpu.matmul %85, %86, %cst_29 {dimension_numbers = #tpu.dot_dimension_numbers<[1], [0], [0], [1], [0, 0, 1, 1], [], []>} : vector<32x8xf32>, vector<8x32xf32>, vector<32x32xf32> -> vector<32x32xf32>
    %c0_30 = arith.constant 0 : index
    %c0_31 = arith.constant 0 : index
    %88 = vector.load %arg6[%c0_30, %c0_31] : memref<32x8xf32, #tpu.memory_space<vmem>>, vector<32x8xf32>
    %c0_32 = arith.constant 0 : index
    %c0_33 = arith.constant 0 : index
    %89 = vector.load %arg8[%c0_32, %c0_33] : memref<8x32xf32, #tpu.memory_space<vmem>>, vector<8x32xf32>
    %cst_34 = arith.constant dense<0.000000e+00> : vector<32x32xf32>
    %90 = tpu.matmul %88, %89, %cst_34 {dimension_numbers = #tpu.dot_dimension_numbers<[1], [0], [0], [1], [0, 0, 1, 1], [], []>} : vector<32x8xf32>, vector<8x32xf32>, vector<32x32xf32> -> vector<32x32xf32>
    %91 = arith.addf %87, %90 : vector<32x32xf32>
    %c0_35 = arith.constant 0 : index
    %c0_36 = arith.constant 0 : index
    %92 = vector.load %arg9[%c0_35, %c0_36] : memref<1x32xf32, #tpu.memory_space<vmem>>, vector<1x32xf32>
    %93 = vector.broadcast %92 : vector<1x32xf32> to vector<32x32xf32>
    %94 = arith.addf %91, %93 : vector<32x32xf32>
    %cst_37 = arith.constant 0.000000e+00 : f32
    %95 = vector.broadcast %cst_37 : f32 to vector<32x32xf32>
    %96 = arith.maximumf %94, %95 : vector<32x32xf32>
    %c0_38 = arith.constant 0 : index
    %c0_39 = arith.constant 0 : index
    %97 = vector.load %arg10[%c0_38, %c0_39] : memref<32x32xf32, #tpu.memory_space<vmem>>, vector<32x32xf32>
    %cst_40 = arith.constant dense<0.000000e+00> : vector<32x32xf32>
    %98 = tpu.matmul %96, %97, %cst_40 {dimension_numbers = #tpu.dot_dimension_numbers<[1], [0], [0], [1], [0, 0, 1, 1], [], []>} : vector<32x32xf32>, vector<32x32xf32>, vector<32x32xf32> -> vector<32x32xf32>
    %c0_41 = arith.constant 0 : index
    %c0_42 = arith.constant 0 : index
    %99 = vector.load %arg11[%c0_41, %c0_42] : memref<1x32xf32, #tpu.memory_space<vmem>>, vector<1x32xf32>
    %100 = vector.broadcast %99 : vector<1x32xf32> to vector<32x32xf32>
    %101 = arith.addf %98, %100 : vector<32x32xf32>
    %c0_43 = arith.constant 0 : index
    %c0_44 = arith.constant 0 : index
    %102 = vector.load %arg12[%c0_43, %c0_44] : memref<32x32xf32, #tpu.memory_space<vmem>>, vector<32x32xf32>
    tpu.vector_store %arg12[%c0_43, %c0_44], %101 {strides = array<i32>} : memref<32x32xf32, #tpu.memory_space<vmem>>, vector<32x32xf32>,
    return
  }
  func.func @transform_0(%arg0: i32) -> (i32, i32) {
    %c0_i32 = arith.constant 0 : i32
    %c0_i32_0 = arith.constant 0 : i32
    %c0_i32_1 = arith.constant 0 : i32
    return %c0_i32, %c0_i32_0 : i32, i32
  }
  func.func @transform_1(%arg0: i32) -> (i32, i32) {
    %c0_i32 = arith.constant 0 : i32
    %c0_i32_0 = arith.constant 0 : i32
    %c0_i32_1 = arith.constant 0 : i32
    return %c0_i32, %c0_i32_0 : i32, i32
  }
  func.func @transform_2(%arg0: i32) -> (i32, i32) {
    %c0_i32 = arith.constant 0 : i32
    %c0_i32_0 = arith.constant 0 : i32
    %c0_i32_1 = arith.constant 0 : i32
    return %c0_i32, %c0_i32_0 : i32, i32
  }
  func.func @transform_3(%arg0: i32) -> (i32, i32) {
    %c0_i32 = arith.constant 0 : i32
    %c0_i32_0 = arith.constant 0 : i32
    return %arg0, %c0_i32 : i32, i32
  }
  func.func @transform_4(%arg0: i32) -> (i32, i32) {
    %c0_i32 = arith.constant 0 : i32
    %c0_i32_0 = arith.constant 0 : i32
    return %arg0, %c0_i32 : i32, i32
  }
  func.func @transform_5(%arg0: i32) -> (i32, i32) {
    %c0_i32 = arith.constant 0 : i32
    %c0_i32_0 = arith.constant 0 : i32
    return %arg0, %c0_i32 : i32, i32
  }
  func.func @transform_6(%arg0: i32) -> (i32, i32) {
    %c0_i32 = arith.constant 0 : i32
    %c0_i32_0 = arith.constant 0 : i32
    %c0_i32_1 = arith.constant 0 : i32
    return %c0_i32, %c0_i32_0 : i32, i32
  }
  func.func @transform_7(%arg0: i32) -> (i32, i32) {
    %c0_i32 = arith.constant 0 : i32
    %c0_i32_0 = arith.constant 0 : i32
    %c0_i32_1 = arith.constant 0 : i32
    return %c0_i32, %c0_i32_0 : i32, i32
  }
  func.func @transform_8(%arg0: i32) -> (i32, i32) {
    %c0_i32 = arith.constant 0 : i32
    %c0_i32_0 = arith.constant 0 : i32
    %c0_i32_1 = arith.constant 0 : i32
    return %c0_i32, %c0_i32_0 : i32, i32
  }
  func.func @transform_9(%arg0: i32) -> (i32, i32) {
    %c0_i32 = arith.constant 0 : i32
    %c0_i32_0 = arith.constant 0 : i32
    %c0_i32_1 = arith.constant 0 : i32
    return %c0_i32, %c0_i32_0 : i32, i32
  }
  func.func @transform_10(%arg0: i32) -> (i32, i32) {
    %c0_i32 = arith.constant 0 : i32
    %c0_i32_0 = arith.constant 0 : i32
    %c0_i32_1 = arith.constant 0 : i32
    return %c0_i32, %c0_i32_0 : i32, i32
  }
  func.func @transform_11(%arg0: i32) -> (i32, i32) {
    %c0_i32 = arith.constant 0 : i32
    %c0_i32_0 = arith.constant 0 : i32
    return %arg0, %c0_i32 : i32, i32
  }
}

</mosaic_0001>

<bundles_post_ra>
// kernel: tpu_custom_call.1
= control target key start
LH: loop header
LB: loop body
LE: loop exit
PB: predicated region body
PF: predicated region fallthrough
CT: control target
= control target key end

     0   :  { %v878_v1 = vmov 2   ;;  %v879_v2 = vmov 1   ;;  %s1240_s0 = inlined_call_operand.vmem [shape: f32[16,8], index: 0, kind: input, shape index: {}]   ;;  %s1241_s1 = inlined_call_operand.vmem [shape: f32[3,16], index: 1, kind: input, shape index: {}]   ;;  %s1242_s2 = inlined_call_operand.vmem [shape: s32[1,16], index: 2, kind: input, shape index: {}]   ;;  %s1243_s3 = inlined_call_operand.vmem [shape: f32[32,3], index: 3, kind: input, shape index: {}]   ;;  %s1244_s4 = inlined_call_operand.vmem [shape: s32[32,1], index: 4, kind: input, shape index: {}]   ;;  %s1245_s5 = inlined_call_operand.vmem [shape: f32[32,8], index: 5, kind: input, shape index: {}]   ;;  %s1246_s6 = inlined_call_operand.vmem [shape: f32[8,32], index: 6, kind: input, shape index: {}]   ;;  %s1247_s7 = inlined_call_operand.vmem [shape: f32[8,32], index: 7, kind: input, shape index: {}]   ;;  %s1248_s8 = inlined_call_operand.vmem [shape: f32[1,32], index: 8, kind: input, shape index: {}]   ;;  %s1249_s9 = inlined_call_operand.vmem [shape: f32[32,32], index: 9, kind: input, shape index: {}]   ;;  %s1250_s10 = inlined_call_operand.vmem [shape: f32[1,32], index: 10, kind: input, shape index: {}]   ;;  %s1251_s11 = inlined_call_operand.hbm [shape: f32[32,32], index: 11, kind: output, shape index: {}]  }
   0x1   :  { %v39_v0 = vld [vmem:[%s1243_s3] sm:$0xff]  ;;  %820 = vset.pattern.permute.xlu1 %v878_v1  ;;  %818 = vset.pattern.permute.xlu0 %v879_v2 }
   0x2   :  { %105 = vperm.xlu1 %820, %v39_v0   ;;  %76 = vperm.xlu0 %818, %v39_v0  }
   0x3   :  { %16 = vsyncpa [#allocation3], 0  ;;  %v40_v3 = vld [vmem:[%s1243_s3 + $0x8] sm:$0xff]  ;;  %v880_v4 = vmov 0   ;;  %v133_v5 = vld [vmem:[%s1244_s4] sm:$0xff]  ;;  %vm221_vm0 = vcmask 130048  }
   0x4   :  { %822 = vset.pattern.permute.xlu2 %v880_v4  ;;  %v41_v6 = vld [vmem:[%s1243_s3 + $0x10] sm:$0xff]  ;;  %v134_v7 = vld [vmem:[%s1244_s4 + $0x8] sm:$0xff]  ;;  %v42_v8 = vld [vmem:[%s1243_s3 + $0x18] sm:$0xff]  ;;  %s881_s15 = smov [#allocation2]   ;;  %s784_s17 = sshll.u32 %s1251_s11, 4  ;;  %s785_s17 = int_to_ptr.hbm [resolvable:$true] %s784_s17 }
   0x5   :  { %53 = vperm.xlu2 %822, %v40_v3   ;;  %v135_v9 = vld [vmem:[%s1244_s4 + $0x10] sm:$0xff]  ;;  %v136_v10 = vld [vmem:[%s1244_s4 + $0x18] sm:$0xff]  ;;  %v43_v14 = vld [vmem:[%s1241_s1] sm:$0x7]  ;;  %s782_s1 = sshll.u32 %s881_s15, 4  ;;  %s783_s1 = int_to_ptr.vmem [resolvable:$true] %s782_s1 }
   0x6   :  { %v91_v15 = vperm.slane %v43_v14, 1  ;;  %v120_v16 = vperm.slane %v43_v14, 2  ;;  %v66_v18 = vperm.slane %v43_v14, 0  ;;  %v833_v28 = vld [vmem:[%s1242_s2] ss:$0 sm:$0xff] }
   0xa   :  { %821 = vset.pattern.permute.xlu1 %v880_v4  ;;  %819 = vset.pattern.permute.xlu0 %v880_v4 }
   0xb   :  { %139 = vperm.xlu1 %821, %v133_v5   ;;  %48 = vperm.xlu0 %819, %v39_v0  }
   0xd   :  { %823 = vset.pattern.permute.xlu2 %v879_v2 }
   0xe   :  { %80 = vperm.xlu2 %823, %v40_v3  }
  0x13   :  { %824 = vset.pattern.permute.xlu1 %v878_v1  ;;  %58 = vperm.xlu0 %819, %v41_v6  }
  0x14   :  { %109 = vperm.xlu1 %824, %v40_v3  }
  0x16   :  { %825 = vset.pattern.permute.xlu2 %v880_v4 }
  0x17   :  { %142 = vperm.xlu2 %825, %v134_v7  }
  0x1b   :  { %830 = vset.pattern.permute.xlu0 %v879_v2 }
  0x1c   :  { %826 = vset.pattern.permute.xlu1 %v879_v2  ;;  %88 = vperm.xlu0 %830, %v42_v8  }
  0x1d   :  { %84 = vperm.xlu1 %826, %v41_v6  }
  0x1f   :  { %827 = vset.pattern.permute.xlu2 %v878_v1 }
  0x20   :  { %113 = vperm.xlu2 %827, %v41_v6  }
  0x24   :  { %832 = vset.pattern.permute.xlu0 %v880_v4 }
  0x25   :  { %828 = vset.pattern.permute.xlu1 %v880_v4 }
  0x26   :  { %145 = vperm.xlu1 %828, %v135_v9  }
  0x28   :  { %829 = vset.pattern.permute.xlu2 %v880_v4 }
  0x29   :  { %63 = vperm.xlu2 %829, %v42_v8  }
  0x2e   :  { %831 = vset.pattern.permute.xlu1 %v878_v1 }
  0x2f   :  { %117 = vperm.xlu1 %831, %v42_v8   ;;  %v219_v8 = vlaneseq }
  0x31   :  { %148 = vperm.xlu2 %829, %v136_v10   ;;  %v990_v9 = vand.u32 127, %v219_v8 }
  0x5f   :  { %v54_v11 = vpop.permute.xlu2 %53 }
  0x60   :  { %v68_v26 = vsub.f32 %v54_v11, %v66_v18 }
  0x62   :  { %v72_v32 = vmul.f32 %v68_v26, %v68_v26 }
  0x68   :  { %v81_v19 = vpop.permute.xlu2 %80 }
  0x69   :  { %v93_v27 = vsub.f32 %v81_v19, %v91_v15 }
  0x6b   :  { %v97_v33 = vmul.f32 %v93_v27, %v93_v27 }
  0x6d   :  { %v101_v39 = vadd.f32 %v97_v33, %v72_v32 }
  0x71   :  { %v143_v34 = vpop.permute.xlu2 %142 }
  0x72   :  { %vm152_vm2 = vcmp.eq.s32.totalorder %v143_v34, %v833_v28 }
  0x74   :  { %v106_v12 = vpop.permute.xlu1 %105  ;;  %v77_v13 = vpop.permute.xlu0 %76 }
  0x75   :  { %v92_v17 = vsub.f32 %v77_v13, %v91_v15  ;;  %v121_v22 = vsub.f32 %v106_v12, %v120_v16 }
  0x77   :  { %v96_v23 = vmul.f32 %v92_v17, %v92_v17  ;;  %v125_v29 = vmul.f32 %v121_v22, %v121_v22 }
  0x7a   :  { %v114_v46 = vpop.permute.xlu2 %113 }
  0x7b   :  { %v123_v48 = vsub.f32 %v114_v46, %v120_v16 }
  0x7d   :  { %v140_v20 = vpop.permute.xlu1 %139  ;;  %v49_v21 = vpop.permute.xlu0 %48  ;;  %v127_v52 = vmul.f32 %v123_v48, %v123_v48 }
  0x7e   :  { %v67_v24 = vsub.f32 %v49_v21, %v66_v18  ;;  %vm151_vm1 = vcmp.eq.s32.totalorder %v140_v20, %v833_v28 }
  0x80   :  { %v71_v25 = vmul.f32 %v67_v24, %v67_v24 }
  0x82   :  { %v100_v30 = vadd.f32 %v96_v23, %v71_v25 }
  0x83   :  { %v64_v57 = vpop.permute.xlu2 %63 }
  0x84   :  { %v129_v31 = vadd.f32 %v125_v29, %v100_v30  ;;  %v70_v58 = vsub.f32 %v64_v57, %v66_v18 }
  0x85   :  { %v59_v42 = vpop.permute.xlu0 %58 }
  0x86   :  { %v110_v35 = vpop.permute.xlu1 %109  ;;  %v974_v36 = vsel %vm151_vm1, %v129_v31, 1e+30  ;;  %v69_v44 = vsub.f32 %v59_v42, %v66_v18  ;;  %v74_v62 = vmul.f32 %v70_v58, %v70_v58 }
  0x87   :  { %v122_v37 = vsub.f32 %v110_v35, %v120_v16  ;;  %v222_v38 = vsel %vm221_vm0, %v974_v36, inf }
  0x88   :  { %223 = vmin.xlane.f32.xlu1 %v222_v38  ;;  %v73_v50 = vmul.f32 %v69_v44, %v69_v44 }
  0x89   :  { %v126_v40 = vmul.f32 %v122_v37, %v122_v37 }
  0x8b   :  { %v130_v41 = vadd.f32 %v126_v40, %v101_v39  ;;  %v149_v3 = vpop.permute.xlu2 %148 }
  0x8c   :  { %vm154_vm4 = vcmp.eq.s32.totalorder %v149_v3, %v833_v28 }
  0x8d   :  { %v978_v43 = vsel %vm152_vm2, %v130_v41, 1e+30 }
  0x8e   :  { %v225_v45 = vsel %vm221_vm0, %v978_v43, inf  ;;  %v89_v54 = vpop.permute.xlu0 %88 }
  0x8f   :  { %226 = vmin.xlane.f32.xlu2 %v225_v45  ;;  %v85_v47 = vpop.permute.xlu1 %84  ;;  %v95_v60 = vsub.f32 %v89_v54, %v91_v15 }
  0x90   :  { %v94_v49 = vsub.f32 %v85_v47, %v91_v15 }
  0x91   :  { %v99_v63 = vmul.f32 %v95_v60, %v95_v60 }
  0x92   :  { %v98_v51 = vmul.f32 %v94_v49, %v94_v49 }
  0x93   :  { %v103_v1 = vadd.f32 %v99_v63, %v74_v62 }
  0x94   :  { %v102_v53 = vadd.f32 %v98_v51, %v73_v50 }
  0x96   :  { %v131_v56 = vadd.f32 %v127_v52, %v102_v53 }
  0x98   :  { %v146_v55 = vpop.permute.xlu1 %145 }
  0x99   :  { %vm153_vm3 = vcmp.eq.s32.totalorder %v146_v55, %v833_v28 }
  0x9a   :  { %v982_v59 = vsel %vm153_vm3, %v131_v56, 1e+30 }
  0x9b   :  { %v228_v61 = vsel %vm221_vm0, %v982_v59, inf }
  0x9c   :  { %229 = vmin.xlane.f32.xlu0 %v228_v61 }
  0xa1   :  { %v118_v0 = vpop.permute.xlu1 %117 }
  0xa2   :  { %v124_v2 = vsub.f32 %v118_v0, %v120_v16 }
  0xa4   :  { %v128_v4 = vmul.f32 %v124_v2, %v124_v2 }
  0xa6   :  { %v132_v5 = vadd.f32 %v128_v4, %v103_v1 }
  0xa8   :  { %v986_v6 = vsel %vm154_vm4, %v132_v5, 1e+30 }
  0xa9   :  { %v231_v7 = vsel %vm221_vm0, %v986_v6, inf }
  0xaa   :  { %232 = vmin.xlane.f32.xlu2 %v231_v7 }
  0xfb   :  { %v224_v10 = vpop.xlane.xlu1 %223 }
  0xfc   :  { %vm234_vm5 = vcmp.le.f32.partialorder %v974_v36, %v224_v10 }
  0xfd   :  { %v238_v11 = vsel %vm234_vm5, %v990_v9, 16 }
  0xfe   :  { %v242_v12 = vsel %vm221_vm0, %v238_v11, 2147483647 }
  0xff   :  { %v244_v13 = vshra.s32 %v242_v12, 16  ;;  %v243_v30 = vand.u32 65535, %v242_v12 }
 0x101   :  { %v246_v14 = vcvt.s32.f32 %v244_v13  ;;  %v245_v32 = vcvt.s32.f32 %v243_v30 }
 0x102   :  { %v227_v15 = vpop.xlane.xlu2 %226 }
 0x103   :  { %vm235_vm6 = vcmp.le.f32.partialorder %v978_v43, %v227_v15  ;;  %247 = vmin.xlane.f32.xlu1 %v246_v14 }
 0x104   :  { %v239_v16 = vsel %vm235_vm6, %v990_v9, 16 }
 0x105   :  { %v257_v17 = vsel %vm221_vm0, %v239_v16, 2147483647 }
 0x106   :  { %v259_v18 = vshra.s32 %v257_v17, 16  ;;  %v258_v34 = vand.u32 65535, %v257_v17 }
 0x108   :  { %v261_v19 = vcvt.s32.f32 %v259_v18  ;;  %v260_v37 = vcvt.s32.f32 %v258_v34 }
 0x10a   :  { %262 = vmin.xlane.f32.xlu2 %v261_v19 }
 0x10f   :  { %v230_v20 = vpop.xlane.xlu0 %229 }
 0x110   :  { %vm236_vm7 = vcmp.le.f32.partialorder %v982_v59, %v230_v20 }
 0x111   :  { %v240_v21 = vsel %vm236_vm7, %v990_v9, 16 }
 0x112   :  { %v272_v22 = vsel %vm221_vm0, %v240_v21, 2147483647 }
 0x113   :  { %v274_v23 = vshra.s32 %v272_v22, 16  ;;  %v273_v39 = vand.u32 65535, %v272_v22 }
 0x115   :  { %v276_v24 = vcvt.s32.f32 %v274_v23  ;;  %v275_v41 = vcvt.s32.f32 %v273_v39 }
 0x117   :  { %277 = vmin.xlane.f32.xlu0 %v276_v24 }
 0x11d   :  { %v233_v25 = vpop.xlane.xlu2 %232 }
 0x11e   :  { %vm237_vm8 = vcmp.le.f32.partialorder %v986_v6, %v233_v25 }
 0x11f   :  { %v241_v26 = vsel %vm237_vm8, %v990_v9, 16 }
 0x120   :  { %v287_v27 = vsel %vm221_vm0, %v241_v26, 2147483647 }
 0x121   :  { %v289_v28 = vshra.s32 %v287_v27, 16  ;;  %v288_v44 = vand.u32 65535, %v287_v27 }
 0x123   :  { %v291_v29 = vcvt.s32.f32 %v289_v28  ;;  %v290_v46 = vcvt.s32.f32 %v288_v44 }
 0x125   :  { %292 = vmin.xlane.f32.xlu1 %v291_v29 }
 0x176   :  { %v248_v31 = vpop.xlane.xlu1 %247 }
 0x177   :  { %vm249_vm9 = vcmp.eq.f32.partialorder %v246_v14, %v248_v31  ;;  %v254_v48 = vcvt.f32.s32 %v248_v31 }
 0x178   :  { %v250_v33 = vsel %vm249_vm9, %v245_v32, inf }
 0x179   :  { %251 = vmin.xlane.f32.xlu2 %v250_v33  ;;  %v255_v50 = vshll.u32 %v254_v48, 16 }
 0x17d   :  { %v263_v35 = vpop.xlane.xlu2 %262 }
 0x17e   :  { %vm264_vm10 = vcmp.eq.f32.partialorder %v261_v19, %v263_v35  ;;  %v269_v53 = vcvt.f32.s32 %v263_v35 }
 0x17f   :  { %v265_v38 = vsel %vm264_vm10, %v260_v37, inf }
 0x180   :  { %266 = vmin.xlane.f32.xlu0 %v265_v38  ;;  %v270_v57 = vshll.u32 %v269_v53, 16 }
 0x18a   :  { %v278_v40 = vpop.xlane.xlu0 %277 }
 0x18b   :  { %vm279_vm11 = vcmp.eq.f32.partialorder %v276_v24, %v278_v40  ;;  %v284_v63 = vcvt.f32.s32 %v278_v40 }
 0x18c   :  { %v280_v42 = vsel %vm279_vm11, %v275_v41, inf }
 0x18d   :  { %281 = vmin.xlane.f32.xlu1 %v280_v42  ;;  %v285_v1 = vshll.u32 %v284_v63, 16 }
 0x198   :  { %v293_v45 = vpop.xlane.xlu1 %292 }
 0x199   :  { %vm294_vm12 = vcmp.eq.f32.partialorder %v291_v29, %v293_v45  ;;  %v299_v7 = vcvt.f32.s32 %v293_v45 }
 0x19a   :  { %v295_v47 = vsel %vm294_vm12, %v290_v46, inf }
 0x19b   :  { %296 = vmin.xlane.f32.xlu2 %v295_v47  ;;  %v300_v10 = vshll.u32 %v299_v7, 16 }
 0x1ec   :  { %v252_v49 = vpop.xlane.xlu2 %251 }
 0x1ed   :  { %v253_v51 = vcvt.f32.s32 %v252_v49 }
 0x1ef   :  { %v1004_v52 = vadd.s32 %v255_v50, %v253_v51 }
 0x1f1   :  { %vm302_vm13 = vcmp.eq.s32.totalorder %v990_v9, %v1004_v52 }
 0x1f2   :  { %v1012_v54 = vsel %vm302_vm13, 1e+30, %v974_v36 }
 0x1f3   :  { %v267_v55 = vpop.xlane.xlu0 %266  ;;  %v318_v56 = vsel %vm221_vm0, %v1012_v54, inf }
 0x1f4   :  { %v268_v58 = vcvt.f32.s32 %v267_v55  ;;  %319 = vmin.xlane.f32.xlu0 %v318_v56  ;;  %v159_v55 = vmax.f32 %v974_v36, 1e-16  ;;  %v160_v56 = vmax.f32 %v978_v43, 1e-16 }
 0x1f6   :  { %v1016_v60 = vadd.s32 %v270_v57, %v268_v58  ;;  %836 = vrcp.f32 %v159_v55  ;;  %v174_v36 = vand.u32 2147483648, %v159_v55  ;;  %vm168_vm11 = vweird.f32 %v159_v55 }
 0x1f7   :  { %838 = vrcp.f32 %v160_v56 }
 0x1f8   :  { %vm303_vm14 = vcmp.eq.s32.totalorder %v990_v9, %v1016_v60 }
 0x1f9   :  { %v1024_v61 = vsel %vm303_vm14, 1e+30, %v978_v43 }
 0x1fa   :  { %v321_v62 = vsel %vm221_vm0, %v1024_v61, inf }
 0x1fb   :  { %322 = vmin.xlane.f32.xlu1 %v321_v62 }
 0x1fc   :  { %v837_v57 = vpop.eup %836 }
 0x1fd   :  { %v164_v58 = vmul.f32 %v837_v57, %v159_v55  ;;  %v839_v62 = vpop.eup %838  ;;  %vm169_vm10 = vweird.f32 %v837_v57 }
 0x1fe   :  { %vm170_vm12 = vmor %vm168_vm11, %vm169_vm10 }
 0x1ff   :  { %v165_v63 = vsub.f32 1.0, %v164_v58 }
 0x200   :  { %v282_v0 = vpop.xlane.xlu1 %281 }
 0x201   :  { %v283_v2 = vcvt.f32.s32 %v282_v0  ;;  %v1076_v0 = vmax.f32 %v982_v59, 1e-16 }
 0x203   :  { %v1028_v3 = vadd.s32 %v285_v1, %v283_v2  ;;  %v178_v1 = vmul.f32 %v839_v62, %v160_v56  ;;  %v166_v2 = vmul.f32 %v837_v57, %v165_v63  ;;  %840 = vrcp.f32 %v1076_v0 }
 0x204   :  { %v202_v60 = vand.u32 2147483648, %v1076_v0 }
 0x205   :  { %vm304_vm15 = vcmp.eq.s32.totalorder %v990_v9, %v1028_v3 }
 0x206   :  { %v1036_v4 = vsel %vm304_vm15, 1e+30, %v982_v59  ;;  %v175_v59 = vor.u32 1.1754944e-38, %v174_v36 }
 0x207   :  { %v324_v5 = vsel %vm221_vm0, %v1036_v4, inf }
 0x208   :  { %325 = vmin.xlane.f32.xlu2 %v324_v5  ;;  %v179_v5 = vsub.f32 1.0, %v178_v1 }
 0x20e   :  { %v297_v8 = vpop.xlane.xlu2 %296 }
 0x20f   :  { %v298_v11 = vcvt.f32.s32 %v297_v8  ;;  %v167_v8 = vadd.f32 %v837_v57, %v166_v2 }
 0x211   :  { %v1040_v12 = vadd.s32 %v300_v10, %v298_v11  ;;  %v172_v10 = vand.u32 2147483647, %v159_v55  ;;  %v180_v11 = vmul.f32 %v839_v62, %v179_v5 }
 0x213   :  { %vm305_vm1 = vcmp.eq.s32.totalorder %v990_v9, %v1040_v12 }
 0x214   :  { %v1048_v13 = vsel %vm305_vm1, 1e+30, %v986_v6 }
 0x215   :  { %v327_v14 = vsel %vm221_vm0, %v1048_v13, inf }
 0x216   :  { %328 = vmin.xlane.f32.xlu0 %v327_v14 }
 0x267   :  { %v320_v15 = vpop.xlane.xlu0 %319 }
 0x268   :  { %vm330_vm2 = vcmp.le.f32.partialorder %v1012_v54, %v320_v15 }
 0x269   :  { %v334_v16 = vsel %vm330_vm2, %v990_v9, 16  ;;  %vm173_vm2 = vcmp.eq.f32.partialorder %v172_v10, 8.507059e+37 }
 0x26a   :  { %v338_v17 = vsel %vm221_vm0, %v334_v16, 2147483647  ;;  %v171_v16 = vsel %vm170_vm12, %v837_v57, %v167_v8 }
 0x26b   :  { %v340_v18 = vshra.s32 %v338_v17, 16  ;;  %v339_v35 = vand.u32 65535, %v338_v17  ;;  %v841_v17 = vpop.eup %840 }
 0x26d   :  { %v342_v19 = vcvt.s32.f32 %v340_v18  ;;  %v341_v38 = vcvt.s32.f32 %v339_v35 }
 0x26e   :  { %v323_v20 = vpop.xlane.xlu1 %322 }
 0x26f   :  { %vm331_vm3 = vcmp.le.f32.partialorder %v1024_v61, %v323_v20  ;;  %343 = vmin.xlane.f32.xlu1 %v342_v19 }
 0x270   :  { %v335_v21 = vsel %vm331_vm3, %v990_v9, 16  ;;  %vm182_vm3 = vweird.f32 %v160_v56 }
 0x271   :  { %v353_v22 = vsel %vm221_vm0, %v335_v21, 2147483647  ;;  %v1080_v21 = vsel %vm173_vm2, %v175_v59, %v171_v16 }
 0x272   :  { %v355_v23 = vshra.s32 %v353_v22, 16  ;;  %v354_v40 = vand.u32 65535, %v353_v22  ;;  %v181_v22 = vadd.f32 %v839_v62, %v180_v11 }
 0x274   :  { %v357_v24 = vcvt.s32.f32 %v355_v23  ;;  %v356_v42 = vcvt.s32.f32 %v354_v40  ;;  %v192_v23 = vmul.f32 %v841_v17, %v1076_v0 }
 0x276   :  { %358 = vmin.xlane.f32.xlu2 %v357_v24 }
 0x27b   :  { %v326_v25 = vpop.xlane.xlu2 %325 }
 0x27c   :  { %vm332_vm4 = vcmp.le.f32.partialorder %v1036_v4, %v326_v25 }
 0x27d   :  { %v336_v26 = vsel %vm332_vm4, %v990_v9, 16  ;;  %vm183_vm4 = vweird.f32 %v839_v62 }
 0x27e   :  { %v368_v27 = vsel %vm221_vm0, %v336_v26, 2147483647 }
 0x27f   :  { %v370_v28 = vshra.s32 %v368_v27, 16  ;;  %v369_v45 = vand.u32 65535, %v368_v27  ;;  %v1093_v27 = vmax.f32 %v986_v6, 1e-16 }
 0x281   :  { %v372_v29 = vcvt.s32.f32 %v370_v28  ;;  %v371_v47 = vcvt.s32.f32 %v369_v45  ;;  %v186_v28 = vand.u32 2147483647, %v160_v56  ;;  %842 = vrcp.f32 %v1093_v27 }
 0x282   :  { %v216_v36 = vand.u32 2147483648, %v1093_v27  ;;  %vm210_vm2 = vweird.f32 %v1093_v27  ;;  %v214_v3 = vand.u32 2147483647, %v1093_v27 }
 0x283   :  { %373 = vmin.xlane.f32.xlu0 %v372_v29 }
 0x289   :  { %v329_v30 = vpop.xlane.xlu0 %328 }
 0x28a   :  { %vm333_vm5 = vcmp.le.f32.partialorder %v1048_v13, %v329_v30 }
 0x28b   :  { %v337_v31 = vsel %vm333_vm5, %v990_v9, 16 }
 0x28c   :  { %v383_v32 = vsel %vm221_vm0, %v337_v31, 2147483647 }
 0x28d   :  { %v385_v33 = vshra.s32 %v383_v32, 16  ;;  %v384_v49 = vand.u32 65535, %v383_v32 }
 0x28f   :  { %v387_v34 = vcvt.s32.f32 %v385_v33  ;;  %v386_v51 = vcvt.s32.f32 %v384_v49 }
 0x291   :  { %388 = vmin.xlane.f32.xlu1 %v387_v34 }
 0x2e2   :  { %v344_v37 = vpop.xlane.xlu1 %343 }
 0x2e3   :  { %vm345_vm6 = vcmp.eq.f32.partialorder %v342_v19, %v344_v37  ;;  %v350_v7 = vcvt.f32.s32 %v344_v37  ;;  %v188_v19 = vand.u32 2147483648, %v160_v56  ;;  %v203_v56 = vor.u32 1.1754944e-38, %v202_v60 }
 0x2e4   :  { %v346_v39 = vsel %vm345_vm6, %v341_v38, inf  ;;  %vm184_vm6 = vmor %vm182_vm3, %vm183_vm4  ;;  %vm215_vm3 = vcmp.eq.f32.partialorder %v214_v3, 8.507059e+37 }
 0x2e5   :  { %347 = vmin.xlane.f32.xlu2 %v346_v39  ;;  %v351_v14 = vshll.u32 %v350_v7, 16  ;;  %v185_v33 = vsel %vm184_vm6, %v839_v62, %v181_v22 }
 0x2e9   :  { %v1064_v41 = vpop.xlane.xlu2 %358 }
 0x2ea   :  { %vm360_vm7 = vcmp.eq.f32.partialorder %v357_v24, %v1064_v41  ;;  %v365_v20 = vcvt.f32.s32 %v1064_v41  ;;  %v306_v24 = vsel %vm302_vm13, %v1080_v21, 0.0  ;;  %vm187_vm13 = vcmp.eq.f32.partialorder %v186_v28, 8.507059e+37 }
 0x2eb   :  { %v361_v44 = vsel %vm360_vm7, %v356_v42, inf }
 0x2ec   :  { %362 = vmin.xlane.f32.xlu0 %v361_v44  ;;  %v366_v32 = vshll.u32 %v365_v20, 16  ;;  %v843_v44 = vpop.eup %842 }
 0x2ed   :  { %vm211_vm12 = vweird.f32 %v843_v44 }
 0x2f6   :  { %v1067_v46 = vpop.xlane.xlu0 %373 }
 0x2f7   :  { %vm375_vm8 = vcmp.eq.f32.partialorder %v372_v29, %v1067_v46  ;;  %v380_v45 = vcvt.f32.s32 %v1067_v46 }
 0x2f8   :  { %v376_v48 = vsel %vm375_vm8, %v371_v47, inf  ;;  %vm197_vm8 = vweird.f32 %v841_v17 }
 0x2f9   :  { %377 = vmin.xlane.f32.xlu1 %v376_v48  ;;  %v206_v48 = vmul.f32 %v843_v44, %v1093_v27 }
 0x2fb   :  { %v207_v58 = vsub.f32 1.0, %v206_v48 }
 0x2fd   :  { %v208_v5 = vmul.f32 %v843_v44, %v207_v58 }
 0x2ff   :  { %v209_v8 = vadd.f32 %v843_v44, %v208_v5 }
 0x304   :  { %v1070_v50 = vpop.xlane.xlu1 %388 }
 0x305   :  { %vm390_vm9 = vcmp.eq.f32.partialorder %v387_v34, %v1070_v50  ;;  %v193_v34 = vsub.f32 1.0, %v192_v23  ;;  %v395_v7 = vcvt.f32.s32 %v1070_v50 }
 0x306   :  { %v391_v53 = vsel %vm390_vm9, %v386_v51, inf  ;;  %v381_v51 = vshll.u32 %v380_v45, 16 }
 0x307   :  { %392 = vmin.xlane.f32.xlu2 %v391_v53  ;;  %v194_v40 = vmul.f32 %v841_v17, %v193_v34 }
 0x309   :  { %v195_v47 = vadd.f32 %v841_v17, %v194_v40 }
 0x358   :  { %v348_v43 = vpop.xlane.xlu2 %347 }
 0x359   :  { %v349_v15 = vcvt.f32.s32 %v348_v43 }
 0x35b   :  { %v352_v18 = vadd.s32 %v351_v14, %v349_v15  ;;  %v217_v14 = vor.u32 1.1754944e-38, %v216_v36 }
 0x35d   :  { %vm398_vm5 = vcmp.eq.s32.totalorder %v990_v9, %v352_v18 }
 0x35e   :  { %v1089_v25 = vsel %vm398_vm5, 1e+30, %v1012_v54  ;;  %v402_v26 = vsel %vm398_vm5, %v1080_v21, 0.0  ;;  %v189_v54 = vor.u32 1.1754944e-38, %v188_v19 }
 0x35f   :  { %v363_v29 = vpop.xlane.xlu0 %362  ;;  %v414_v30 = vsel %vm221_vm0, %v1089_v25, inf  ;;  %v1097_v31 = vadd.f32 %v402_v26, %v306_v24 }
 0x360   :  { %v364_v52 = vcvt.f32.s32 %v363_v29  ;;  %415 = vmin.xlane.f32.xlu0 %v414_v30  ;;  %v1101_v6 = vsel %vm187_vm13, %v189_v54, %v185_v33 }
 0x361   :  { %v307_v37 = vsel %vm303_vm14, %v1101_v6, 0.0  ;;  %vm196_vm14 = vweird.f32 %v1076_v0 }
 0x362   :  { %v367_v35 = vadd.s32 %v366_v32, %v364_v52  ;;  %vm198_vm9 = vmor %vm196_vm14, %vm197_vm8 }
 0x363   :  { %v199_v55 = vsel %vm198_vm9, %v841_v17, %v195_v47 }
 0x364   :  { %vm399_vm7 = vcmp.eq.s32.totalorder %v990_v9, %v367_v35 }
 0x365   :  { %v1109_v38 = vsel %vm399_vm7, 1e+30, %v1024_v61  ;;  %v403_v39 = vsel %vm399_vm7, %v1101_v6, 0.0  ;;  %v200_v61 = vand.u32 2147483647, %v1076_v0 }
 0x366   :  { %v417_v41 = vsel %vm221_vm0, %v1109_v38, inf  ;;  %v1114_v42 = vadd.f32 %v403_v39, %v307_v37 }
 0x367   :  { %418 = vmin.xlane.f32.xlu1 %v417_v41  ;;  %vm201_vm10 = vcmp.eq.f32.partialorder %v200_v61, 8.507059e+37 }
 0x368   :  { %v1121_v46 = vsel %vm201_vm10, %v203_v56, %v199_v55 }
 0x369   :  { %v308_v62 = vsel %vm304_vm15, %v1121_v46, 0.0  ;;  %vm212_vm15 = vmor %vm210_vm2, %vm211_vm12 }
 0x36a   :  { %v213_v11 = vsel %vm212_vm15, %v843_v44, %v209_v8  ;;  %vm629_vm15 = vcmask 64512  }
 0x36b   :  { %v1137_v16 = vsel %vm215_vm3, %v217_v14, %v213_v11 }
 0x36c   :  { %v378_v49 = vpop.xlane.xlu1 %377  ;;  %v309_v50 = vsel %vm305_vm1, %v1137_v16, 0.0 }
 0x36d   :  { %v379_v53 = vcvt.f32.s32 %v378_v49 }
 0x36f   :  { %v382_v57 = vadd.s32 %v381_v51, %v379_v53 }
 0x371   :  { %vm400_vm11 = vcmp.eq.s32.totalorder %v990_v9, %v382_v57 }
 0x372   :  { %v412_v63 = vsel %vm400_vm11, 1e+30, %v1036_v4  ;;  %v404_v0 = vsel %vm400_vm11, %v1121_v46, 0.0  ;;  %v396_v4 = vshll.u32 %v395_v7, 16 }
 0x373   :  { %v420_v1 = vsel %vm221_vm0, %v412_v63, inf  ;;  %v1131_v2 = vadd.f32 %v404_v0, %v308_v62  ;;  %v45_v62 = vld [vmem:[%s1240_s0 + $0x8] sm:$0xff] }
 0x374   :  { %421 = vmin.xlane.f32.xlu2 %v420_v1  ;;  %544 = vmatpush.msra.mxu0 %v45_v62 }
 0x37a   :  { %v393_v10 = vpop.xlane.xlu2 %392 }
 0x37b   :  { %v394_v43 = vcvt.f32.s32 %v393_v10 }
 0x37d   :  { %v397_v15 = vadd.s32 %v396_v4, %v394_v43 }
 0x37f   :  { %vm401_vm4 = vcmp.eq.s32.totalorder %v990_v9, %v397_v15 }
 0x380   :  { %v413_v17 = vsel %vm401_vm4, 1e+30, %v1048_v13  ;;  %v405_v59 = vsel %vm401_vm4, %v1137_v16, 0.0 }
 0x381   :  { %v423_v18 = vsel %vm221_vm0, %v413_v17, inf  ;;  %v1147_v19 = vadd.f32 %v405_v59, %v309_v50 }
 0x382   :  { %424 = vmin.xlane.f32.xlu0 %v423_v18 }
 0x3d3   :  { %v416_v20 = vpop.xlane.xlu0 %415 }
 0x3d4   :  { %vm426_vm5 = vcmp.le.f32.partialorder %v1089_v25, %v416_v20 }
 0x3d5   :  { %v430_v22 = vsel %vm426_vm5, %v990_v9, 16 }
 0x3d6   :  { %v434_v23 = vsel %vm221_vm0, %v430_v22, 2147483647 }
 0x3d7   :  { %v436_v24 = vshra.s32 %v434_v23, 16  ;;  %v435_v39 = vand.u32 65535, %v434_v23 }
 0x3d9   :  { %v438_v26 = vcvt.s32.f32 %v436_v24  ;;  %v437_v41 = vcvt.s32.f32 %v435_v39 }
 0x3da   :  { %v419_v12 = vpop.xlane.xlu1 %418 }
 0x3db   :  { %vm427_vm1 = vcmp.le.f32.partialorder %v1109_v38, %v419_v12  ;;  %439 = vmin.xlane.f32.xlu1 %v438_v26 }
 0x3dc   :  { %v431_v13 = vsel %vm427_vm1, %v990_v9, 16 }
 0x3dd   :  { %v449_v27 = vsel %vm221_vm0, %v431_v13, 2147483647 }
 0x3de   :  { %v451_v28 = vshra.s32 %v449_v27, 16  ;;  %v450_v45 = vand.u32 65535, %v449_v27 }
 0x3e0   :  { %v453_v29 = vcvt.s32.f32 %v451_v28  ;;  %v452_v60 = vcvt.s32.f32 %v450_v45 }
 0x3e2   :  { %454 = vmin.xlane.f32.xlu2 %v453_v29 }
 0x3e7   :  { %v422_v30 = vpop.xlane.xlu2 %421 }
 0x3e8   :  { %vm428_vm6 = vcmp.le.f32.partialorder %v412_v63, %v422_v30  ;;  %v44_v63 = vld [vmem:[%s1240_s0] sm:$0xff]  ;;  %s883_s0 = smov 8  }
 0x3e9   :  { %v432_v25 = vsel %vm428_vm6, %v990_v9, 16  ;;  %545 = vmatpush.msra.mxu0 %v44_v63  ;;  %v628_v30 = vld [vmem:[%s1247_s7] sm:$0xff]  ;;  %v627_v63 = vld [vmem:[%s1245_s5 + $0x18] sm:$0xff] }
 0x3ea   :  { %v464_v32 = vsel %vm221_vm0, %v432_v25, 2147483647  ;;  %657 = vmatpush.msra.mxu1 %v628_v30  ;;  %v625_v25 = vld [vmem:[%s1245_s5 + $0x8] sm:$0xff]  ;;  %v724_v30 = vld [vmem:[%s1249_s9] sm:$0xff] }
 0x3eb   :  { %v466_v52 = vshra.s32 %v464_v32, 16  ;;  %v465_v48 = vand.u32 65535, %v464_v32 }
 0x3ed   :  { %v468_v33 = vcvt.s32.f32 %v466_v52  ;;  %v467_v51 = vcvt.s32.f32 %v465_v48 }
 0x3ef   :  { %469 = vmin.xlane.f32.xlu0 %v468_v33 }
 0x3f5   :  { %v425_v54 = vpop.xlane.xlu0 %424 }
 0x3f6   :  { %vm429_vm13 = vcmp.le.f32.partialorder %v413_v17, %v425_v54 }
 0x3f7   :  { %v433_v34 = vsel %vm429_vm13, %v990_v9, 16 }
 0x3f8   :  { %v479_v35 = vsel %vm221_vm0, %v433_v34, 2147483647 }
 0x3f9   :  { %v481_v37 = vshra.s32 %v479_v35, 16  ;;  %v480_v55 = vand.u32 65535, %v479_v35 }
 0x3fb   :  { %v483_v38 = vcvt.s32.f32 %v481_v37  ;;  %v482_v57 = vcvt.s32.f32 %v480_v55 }
 0x3fd   :  { %484 = vmin.xlane.f32.xlu1 %v483_v38 }
 0x44e   :  { %v440_v40 = vpop.xlane.xlu1 %439 }
 0x44f   :  { %vm441_vm7 = vcmp.eq.f32.partialorder %v438_v26, %v440_v40  ;;  %v446_v0 = vcvt.f32.s32 %v440_v40 }
 0x450   :  { %v442_v44 = vsel %vm441_vm7, %v437_v41, inf }
 0x451   :  { %443 = vmin.xlane.f32.xlu2 %v442_v44  ;;  %v447_v5 = vshll.u32 %v446_v0, 16  ;;  %v626_v44 = vld [vmem:[%s1245_s5 + $0x10] sm:$0xff] }
 0x455   :  { %v455_v47 = vpop.xlane.xlu2 %454 }
 0x456   :  { %vm456_vm8 = vcmp.eq.f32.partialorder %v453_v29, %v455_v47  ;;  %v461_v36 = vcvt.f32.s32 %v455_v47 }
 0x457   :  { %v457_v61 = vsel %vm456_vm8, %v452_v60, inf }
 0x458   :  { %458 = vmin.xlane.f32.xlu0 %v457_v61  ;;  %v462_v43 = vshll.u32 %v461_v36, 16 }
 0x462   :  { %v470_v49 = vpop.xlane.xlu0 %469 }
 0x463   :  { %vm471_vm14 = vcmp.eq.f32.partialorder %v468_v33, %v470_v49 }
 0x464   :  { %v472_v53 = vsel %vm471_vm14, %v467_v51, inf }
 0x465   :  { %473 = vmin.xlane.f32.xlu1 %v472_v53 }
 0x470   :  { %v485_v56 = vpop.xlane.xlu1 %484 }
 0x471   :  { %vm486_vm9 = vcmp.eq.f32.partialorder %v483_v38, %v485_v56 }
 0x472   :  { %v487_v58 = vsel %vm486_vm9, %v482_v57, inf }
 0x473   :  { %488 = vmin.xlane.f32.xlu2 %v487_v58 }
 0x4c4   :  { %v444_v1 = vpop.xlane.xlu2 %443 }
 0x4c5   :  { %v445_v7 = vcvt.f32.s32 %v444_v1 }
 0x4c7   :  { %v448_v8 = vadd.s32 %v447_v5, %v445_v7 }
 0x4c9   :  { %vm494_vm10 = vcmp.eq.s32.totalorder %v990_v9, %v448_v8 }
 0x4ca   :  { %v498_v3 = vsel %vm494_vm10, %v1080_v21, 0.0  ;;  %v476_v21 = vcvt.f32.s32 %v470_v49 }
 0x4cb   :  { %v459_v10 = vpop.xlane.xlu0 %458  ;;  %v502_v4 = vadd.f32 %v498_v3, %v1097_v31 }
 0x4cc   :  { %v460_v11 = vcvt.f32.s32 %v459_v10  ;;  %v477_v18 = vshll.u32 %v476_v21, 16 }
 0x4cd   :  { %796 = vmatmul.msk.f32.vlgmr.msra.gmra.mxu0 %vm221_vm0, %v502_v4  ;;  %v506_v14 = vsel %vm221_vm0, %v502_v4, 0.0 }
 0x4ce   :  { %v463_v15 = vadd.s32 %v462_v43, %v460_v11  ;;  %507 = vadd.xlane.f32.xlu0 %v506_v14 }
 0x4d0   :  { %vm495_vm11 = vcmp.eq.s32.totalorder %v990_v9, %v463_v15 }
 0x4d1   :  { %v499_v50 = vsel %vm495_vm11, %v1101_v6, 0.0 }
 0x4d2   :  { %v503_v17 = vadd.f32 %v499_v50, %v1114_v42  ;;  %v491_v42 = vcvt.f32.s32 %v485_v56 }
 0x4d4   :  { %v509_v59 = vsel %vm221_vm0, %v503_v17, 0.0  ;;  %v492_v12 = vshll.u32 %v491_v42, 16 }
 0x4d5   :  { %510 = vadd.xlane.f32.xlu1 %v509_v59  ;;  %797 = vmatmul.msk.f32.gmra.mxu0 %vm221_vm0, %v503_v17 }
 0x4d8   :  { %v474_v31 = vpop.xlane.xlu1 %473 }
 0x4d9   :  { %v475_v20 = vcvt.f32.s32 %v474_v31 }
 0x4db   :  { %v478_v22 = vadd.s32 %v477_v18, %v475_v20 }
 0x4dd   :  { %vm496_vm12 = vcmp.eq.s32.totalorder %v990_v9, %v478_v22 }
 0x4de   :  { %v500_v23 = vsel %vm496_vm12, %v1121_v46, 0.0 }
 0x4df   :  { %v504_v24 = vadd.f32 %v500_v23, %v1131_v2  ;;  %v623_v2 = vld [vmem:[%s1246_s6] sm:$0xff] }
 0x4e0   :  { %698 = vmatpush.msra.mxu2 %v623_v2  ;;  %v725_v2 = vld [vmem:[%s1249_s9 + $0x8] sm:$0xff] }
 0x4e1   :  { %798 = vmatmul.msk.f32.gmra.mxu0 %vm221_vm0, %v504_v24  ;;  %v512_v6 = vsel %vm221_vm0, %v504_v24, 0.0 }
 0x4e2   :  { %513 = vadd.xlane.f32.xlu2 %v512_v6 }
 0x4e6   :  { %v489_v26 = vpop.xlane.xlu2 %488 }
 0x4e7   :  { %v490_v13 = vcvt.f32.s32 %v489_v26 }
 0x4e9   :  { %v493_v27 = vadd.s32 %v492_v12, %v490_v13 }
 0x4eb   :  { %vm497_vm2 = vcmp.eq.s32.totalorder %v990_v9, %v493_v27  ;;  %v624_v9 = vld [vmem:[%s1245_s5] sm:$0xff] }
 0x4ec   :  { %v501_v28 = vsel %vm497_vm2, %v1137_v16, 0.0  ;;  %800 = vmatmul.msk.f32.vlgmr.msra.gmra.mxu1 %vm629_vm15, %v624_v9 }
 0x4ed   :  { %v505_v29 = vadd.f32 %v501_v28, %v1147_v19 }
 0x4ef   :  { %799 = vmatmul.msk.f32.gmra.mxu0 %vm221_vm0, %v505_v29  ;;  %v515_v46 = vsel %vm221_vm0, %v505_v29, 0.0  ;;  %v727_v29 = vld [vmem:[%s1249_s9 + $0x18] sm:$0xff] }
 0x4f0   :  { %516 = vadd.xlane.f32.xlu0 %v515_v46  ;;  %757 = vmatpush.msra.mxu3 %v727_v29  ;;  %v726_v46 = vld [vmem:[%s1249_s9 + $0x10] sm:$0xff] }
 0x4f2   :  { %758 = vmatpush.msra.mxu3 %v726_v46 }
 0x4f4   :  { %801 = vmatmul.msk.f32.gmra.mxu1 %vm629_vm15, %v625_v25  ;;  %759 = vmatpush.msra.mxu3 %v725_v2 }
 0x4f6   :  { %760 = vmatpush.msra.mxu3 %v724_v30 }
 0x4fc   :  { %802 = vmatmul.msk.f32.gmra.mxu1 %vm629_vm15, %v626_v44 }
 0x504   :  { %803 = vmatmul.msk.f32.gmra.mxu1 %vm629_vm15, %v627_v63 }
 0x541   :  { %v508_v16 = vpop.xlane.xlu0 %507 }
 0x542   :  { %v559_v19 = vmax.f32 %v508_v16, 1e-36  ;;  %v834_v16 = vld [vmem:[%s1248_s8] ss:$0 sm:$0xff] }
 0x544   :  { %844 = vrcp.f32 %v559_v19  ;;  %v574_v35 = vand.u32 2147483648, %v559_v19  ;;  %v572_v38 = vand.u32 2147483647, %v559_v19  ;;  %vm568_vm3 = vweird.f32 %v559_v19 }
 0x546   :  { %v575_v47 = vor.u32 1.1754944e-38, %v574_v35  ;;  %vm573_vm5 = vcmp.eq.f32.partialorder %v572_v38, 8.507059e+37 }
 0x548   :  { %v511_v32 = vpop.xlane.xlu1 %510 }
 0x549   :  { %v560_v52 = vmax.f32 %v511_v32, 1e-36 }
 0x54a   :  { %v845_v33 = vpop.eup %844  ;;  %v547_v40 = vpop.f32.mrf.mxu0 }
 0x54b   :  { %846 = vrcp.f32 %v560_v52  ;;  %v564_v54 = vmul.f32 %v845_v33, %v559_v19  ;;  %vm569_vm0 = vweird.f32 %v845_v33  ;;  %v588_v51 = vand.u32 2147483648, %v560_v52 }
 0x54c   :  { %vm570_vm4 = vmor %vm568_vm3, %vm569_vm0  ;;  %v586_v56 = vand.u32 2147483647, %v560_v52  ;;  %vm582_vm6 = vweird.f32 %v560_v52 }
 0x54d   :  { %v565_v34 = vsub.f32 1.0, %v564_v54  ;;  %v589_v62 = vor.u32 1.1754944e-38, %v588_v51 }
 0x54e   :  { %vm587_vm7 = vcmp.eq.f32.partialorder %v586_v56, 8.507059e+37 }
 0x54f   :  { %v566_v37 = vmul.f32 %v845_v33, %v565_v34 }
 0x551   :  { %v847_v39 = vpop.eup %846  ;;  %v567_v41 = vadd.f32 %v845_v33, %v566_v37 }
 0x552   :  { %v578_v45 = vmul.f32 %v847_v39, %v560_v52  ;;  %vm583_vm1 = vweird.f32 %v847_v39  ;;  %v550_v1 = vpop.f32.mrf.mxu0 }
 0x553   :  { %v571_v60 = vsel %vm570_vm4, %v845_v33, %v567_v41  ;;  %vm584_vm13 = vmor %vm582_vm6, %vm583_vm1 }
 0x554   :  { %v576_v61 = vsel %vm573_vm5, %v575_v47, %v571_v60  ;;  %v579_v48 = vsub.f32 1.0, %v578_v45 }
 0x555   :  { %v619_v49 = vmul.f32 %v576_v61, %v547_v40  ;;  %v514_v53 = vpop.xlane.xlu2 %513 }
 0x556   :  { %v580_v55 = vmul.f32 %v847_v39, %v579_v48  ;;  %v561_v57 = vmax.f32 %v514_v53, 1e-36 }
 0x557   :  { %804 = vmatmul.msk.f32.vlgmr.msra.gmra.mxu2 %vm629_vm15, %v619_v49  ;;  %v835_v49 = vld [vmem:[%s1250_s10] ss:$0 sm:$0xff]  ;;  %s882_s10 = smov 128  }
 0x558   :  { %v581_v58 = vadd.f32 %v847_v39, %v580_v55  ;;  %848 = vrcp.f32 %v561_v57  ;;  %v602_v10 = vand.u32 2147483648, %v561_v57  ;;  %v600_v43 = vand.u32 2147483647, %v561_v57 }
 0x559   :  { %vm596_vm14 = vweird.f32 %v561_v57 }
 0x55a   :  { %v585_v0 = vsel %vm584_vm13, %v847_v39, %v581_v58  ;;  %v603_v50 = vor.u32 1.1754944e-38, %v602_v10  ;;  %vm601_vm10 = vcmp.eq.f32.partialorder %v600_v43, 8.507059e+37 }
 0x55b   :  { %v590_v5 = vsel %vm587_vm7, %v589_v62, %v585_v0 }
 0x55c   :  { %v620_v7 = vmul.f32 %v590_v5, %v550_v1 }
 0x55e   :  { %v849_v8 = vpop.eup %848  ;;  %v553_v59 = vpop.f32.mrf.mxu0 }
 0x55f   :  { %v592_v36 = vmul.f32 %v849_v8, %v561_v57  ;;  %805 = vmatmul.msk.f32.gmra.mxu2 %vm629_vm15, %v620_v7  ;;  %vm597_vm8 = vweird.f32 %v849_v8 }
 0x560   :  { %vm598_vm9 = vmor %vm596_vm14, %vm597_vm8 }
 0x561   :  { %v593_v3 = vsub.f32 1.0, %v592_v36 }
 0x563   :  { %v594_v4 = vmul.f32 %v849_v8, %v593_v3  ;;  %v517_v11 = vpop.xlane.xlu0 %516 }
 0x564   :  { %v562_v14 = vmax.f32 %v517_v11, 1e-36 }
 0x565   :  { %v595_v15 = vadd.f32 %v849_v8, %v594_v4 }
 0x566   :  { %850 = vrcp.f32 %v562_v14  ;;  %v616_v23 = vand.u32 2147483648, %v562_v14  ;;  %v614_v6 = vand.u32 2147483647, %v562_v14  ;;  %vm610_vm12 = vweird.f32 %v562_v14 }
 0x567   :  { %v599_v17 = vsel %vm598_vm9, %v849_v8, %v595_v15 }
 0x568   :  { %v604_v21 = vsel %vm601_vm10, %v603_v50, %v599_v17  ;;  %v617_v26 = vor.u32 1.1754944e-38, %v616_v23  ;;  %vm615_vm0 = vcmp.eq.f32.partialorder %v614_v6, 8.507059e+37 }
 0x569   :  { %v621_v31 = vmul.f32 %v604_v21, %v553_v59  ;;  %v659_v9 = vpop.f32.mrf.mxu1 }
 0x56b   :  { %806 = vmatmul.msk.f32.gmra.mxu2 %vm629_vm15, %v621_v31 }
 0x56c   :  { %v851_v18 = vpop.eup %850  ;;  %v556_v13 = vpop.f32.mrf.mxu0 }
 0x56d   :  { %v606_v20 = vmul.f32 %v851_v18, %v562_v14  ;;  %vm611_vm11 = vweird.f32 %v851_v18 }
 0x56e   :  { %vm612_vm2 = vmor %vm610_vm12, %vm611_vm11 }
 0x56f   :  { %v607_v22 = vsub.f32 1.0, %v606_v20 }
 0x571   :  { %v608_v24 = vmul.f32 %v851_v18, %v607_v22  ;;  %v662_v33 = vpop.f32.mrf.mxu1 }
 0x573   :  { %v609_v42 = vadd.f32 %v851_v18, %v608_v24 }
 0x575   :  { %v613_v12 = vsel %vm612_vm2, %v851_v18, %v609_v42 }
 0x576   :  { %v618_v27 = vsel %vm615_vm0, %v617_v26, %v613_v12 }
 0x577   :  { %v622_v28 = vmul.f32 %v618_v27, %v556_v13 }
 0x579   :  { %807 = vmatmul.msk.f32.gmra.mxu2 %vm629_vm15, %v622_v28  ;;  %vm732_vm15 = vcmask 261120   ;;  %v665_v38 = vpop.f32.mrf.mxu1 }
 0x581   :  { %v668_v45 = vpop.f32.mrf.mxu1 }
 0x5da   :  { %v700_v19 = vpop.f32.mrf.mxu2 }
 0x5db   :  { %v701_v25 = vadd.f32 %v700_v19, %v659_v9 }
 0x5dd   :  { %v716_v32 = vadd.f32 %v834_v16, %v701_v25 }
 0x5df   :  { %v720_v52 = vmax.f32 %v716_v32, 0.0 }
 0x5e1   :  { %808 = vmatmul.msk.f32.vlgmr.msra.gmra.mxu3 %vm732_vm15, %v720_v52 }
 0x5e2   :  { %v703_v54 = vpop.f32.mrf.mxu2 }
 0x5e3   :  { %v704_v34 = vadd.f32 %v703_v54, %v662_v33 }
 0x5e5   :  { %v717_v35 = vadd.f32 %v834_v16, %v704_v34 }
 0x5e7   :  { %v721_v37 = vmax.f32 %v717_v35, 0.0 }
 0x5e9   :  { %809 = vmatmul.msk.f32.gmra.mxu3 %vm732_vm15, %v721_v37 }
 0x5ee   :  { %v706_v39 = vpop.f32.mrf.mxu2 }
 0x5ef   :  { %v707_v40 = vadd.f32 %v706_v39, %v665_v38 }
 0x5f1   :  { %v718_v41 = vadd.f32 %v834_v16, %v707_v40 }
 0x5f3   :  { %v722_v44 = vmax.f32 %v718_v41, 0.0 }
 0x5f5   :  { %810 = vmatmul.msk.f32.gmra.mxu3 %vm732_vm15, %v722_v44 }
 0x5fc   :  { %v709_v47 = vpop.f32.mrf.mxu2 }
 0x5fd   :  { %v710_v60 = vadd.f32 %v709_v47, %v668_v45 }
 0x5ff   :  { %v719_v61 = vadd.f32 %v834_v16, %v710_v60 }
 0x601   :  { %v723_v48 = vmax.f32 %v719_v61, 0.0 }
 0x603   :  { %811 = vmatmul.msk.f32.gmra.mxu3 %vm732_vm15, %v723_v48 }
 0x664   :  { %v762_v51 = vpop.f32.mrf.mxu3 }
 0x665   :  { %v763_v53 = vadd.f32 %v835_v49, %v762_v51 }
 0x667   :  { %774 = vst.msk [vmem:[#allocation2] sm:$0xff] %vm732_vm15, %v763_v53 }
 0x66c   :  { %v765_v55 = vpop.f32.mrf.mxu3 }
 0x66d   :  { %v766_v56 = vadd.f32 %v835_v49, %v765_v55 }
 0x66f   :  { %775 = vst.msk [vmem:[#allocation2 + $0x8] sm:$0xff] %vm732_vm15, %v766_v56 }
 0x678   :  { %v768_v57 = vpop.f32.mrf.mxu3 }
 0x679   :  { %v769_v58 = vadd.f32 %v835_v49, %v768_v57 }
 0x67b   :  { %776 = vst.msk [vmem:[#allocation2 + $0x10] sm:$0xff] %vm732_vm15, %v769_v58 }
 0x686   :  { %v771_v62 = vpop.f32.mrf.mxu3 }
 0x687   :  { %v772_v63 = vadd.f32 %v835_v49, %v771_v62 }
 0x689   :  { %777 = vst.msk [vmem:[#allocation2 + $0x18] sm:$0xff] %vm732_vm15, %v772_v63 }
 0x68a   :  { %790 = dma.vmem_to_hbm [thread:$0]  %s783_s1, 512, %s785_s17, [#allocation3], %s882_s10, %s882_s10, %s883_s0  }
 0x68b   :  { %876 = dma.done.wait [#allocation3], 512  }
 0x68c   :  { %877 = vsyncadd [#allocation3], 4294966784 }
 0x68d   :  { %795 = vsyncpa [#allocation3], 1 }

</bundles_post_ra>
